<compile_context>
chip_gen: v7x
topology: tpu7x:2x2x1
jax: 0.10.0
libtpu: 0.0.40
codegen_flags: <defaults>
</compile_context>

<pallas_src>
import functools

import jax
import jax.numpy as jnp
from jax import lax
from jax.experimental import pallas as pl
from jax.experimental.pallas import tpu as pltpu


def _round_up(n, m):
    return ((n + m - 1) // m) * m


def _pad_to(x, shape):
    pads = [(0, t - s) for s, t in zip(x.shape, shape)]
    if all(p == (0, 0) for p in pads):
        return x
    return jnp.pad(x, pads)


@functools.lru_cache(maxsize=None)
def _vmem_limit_bytes():
    # v5e/v6e: 128 MiB physical VMEM -> ~96 MiB budget; v7x: 64 MiB -> ~48 MiB.
    try:
        info = pltpu.get_tpu_info()
        cap = int(getattr(info, "vmem_capacity_bytes", 64 * 1024 * 1024))
    except Exception:  # pragma: no cover - defensive fallback
        cap = 64 * 1024 * 1024
    return max(32 * 1024 * 1024, min((cap * 3) // 4, 100 * 1024 * 1024))


# ----------------------------------------------------------------------------
# level dispatch (mirrors onmt/models/multi_decoders_model.py::_get_level)
# ----------------------------------------------------------------------------
def _get_level(levels):
    levels_list = levels.tolist()          # host sync; stays outside jit
    assert len(set(levels_list)) == 1
    return levels_list[0]


# ----------------------------------------------------------------------------
# Fused encoder + decoder-with-attention kernel (one batch row per grid step)
# ----------------------------------------------------------------------------
def _fused_enc_dec_kernel(len_ref,                     # scalar prefetch (SMEM)
                          src_ref, tgt_ref,            # (1,S,E) / (1,T,E) bf16
                          w_enc_ref, b_enc_ref,        # (E,H) bf16 / (1,H) f32
                          w_in_ref, b_in_ref,          # (E,H) bf16 / (1,H) f32
                          w_h_ref, w_ctx_ref, b_out_ref,  # (H,H) bf16 x2 / (1,H)
                          out_ref, attn_ref):          # (1,T,H) / (1,T,S) f32
    b = pl.program_id(0)

    # ---- encoder (fused): memory bank for this batch row --------------------
    mem = jnp.tanh(
        jnp.dot(src_ref[0], w_enc_ref[...],
                preferred_element_type=jnp.float32)
        + b_enc_ref[...])                                   # (S_pad, H_pad) f32
    mem_bf = mem.astype(jnp.bfloat16)

    # ---- decoder input projection -------------------------------------------
    h = jnp.tanh(
        jnp.dot(tgt_ref[0], w_in_ref[...],
                preferred_element_type=jnp.float32)
        + b_in_ref[...])                                    # (T_pad, H_pad) f32
    h_bf = h.astype(jnp.bfloat16)

    # ---- length-masked dot-product attention --------------------------------
    # contract the hidden dim directly (no explicit transpose / XLU pass)
    scores = lax.dot_general(h_bf, mem_bf, (((1,), (1,)), ((), ())),
                             preferred_element_type=jnp.float32)  # (T_pad, S_pad)

    length = len_ref[b]                                     # scalar int32 (SMEM)
    src_pos = lax.broadcasted_iota(jnp.int32, scores.shape, 1)
    scores = jnp.where(src_pos < length, scores, -1e30)

    m = jnp.max(scores, axis=-1, keepdims=True)
    e = jnp.exp(scores - m)
    p = e * pl.reciprocal(jnp.sum(e, axis=-1, keepdims=True), approx=True)

    ctx = jnp.dot(p.astype(jnp.bfloat16), mem_bf,
                  preferred_element_type=jnp.float32)       # (T_pad, H_pad) f32

    # ---- output projection: concat split into two matmuls -------------------
    out = jnp.tanh(
        jnp.dot(h_bf, w_h_ref[...], preferred_element_type=jnp.float32)
        + jnp.dot(ctx.astype(jnp.bfloat16), w_ctx_ref[...],
                  preferred_element_type=jnp.float32)
        + b_out_ref[...])
    out_ref[0] = out
    attn_ref[0] = p


def fused_encoder_decoder(src_emb, tgt_emb, lens,
                          w_enc, b_enc, w_in, b_in, w_h, w_ctx, b_out):
    # src_emb: (B, S_pad, E_pad) bf16   tgt_emb: (B, T_pad, E_pad) bf16
    # lens   : (B,) int32  -> scalar-prefetched into SMEM
    B, S_pad, E_pad = src_emb.shape
    _, T_pad, _ = tgt_emb.shape
    H_pad = w_enc.shape[1]

    grid_spec = pltpu.PrefetchScalarGridSpec(
        num_scalar_prefetch=1,
        grid=(B,),
        in_specs=[
            pl.BlockSpec((1, S_pad, E_pad), lambda b, ln: (b, 0, 0)),
            pl.BlockSpec((1, T_pad, E_pad), lambda b, ln: (b, 0, 0)),
            pl.BlockSpec((E_pad, H_pad), lambda b, ln: (0, 0)),
            pl.BlockSpec((1, H_pad), lambda b, ln: (0, 0)),
            pl.BlockSpec((E_pad, H_pad), lambda b, ln: (0, 0)),
            pl.BlockSpec((1, H_pad), lambda b, ln: (0, 0)),
            pl.BlockSpec((H_pad, H_pad), lambda b, ln: (0, 0)),
            pl.BlockSpec((H_pad, H_pad), lambda b, ln: (0, 0)),
            pl.BlockSpec((1, H_pad), lambda b, ln: (0, 0)),
        ],
        out_specs=[
            pl.BlockSpec((1, T_pad, H_pad), lambda b, ln: (b, 0, 0)),
            pl.BlockSpec((1, T_pad, S_pad), lambda b, ln: (b, 0, 0)),
        ],
    )
    return pl.pallas_call(
        _fused_enc_dec_kernel,
        out_shape=(
            jax.ShapeDtypeStruct((B, T_pad, H_pad), jnp.float32),
            jax.ShapeDtypeStruct((B, T_pad, S_pad), jnp.float32),
        ),
        grid_spec=grid_spec,
        compiler_params=pltpu.CompilerParams(
            dimension_semantics=("parallel",),
            vmem_limit_bytes=_vmem_limit_bytes()),
    )(lens, src_emb, tgt_emb, w_enc, b_enc, w_in, b_in, w_h, w_ctx, b_out)


# ----------------------------------------------------------------------------
# jitted forward glue (gathers, pads, output slicing) — level picked outside
# ----------------------------------------------------------------------------
@functools.partial(jax.jit, static_argnames=("hidden",))
def _nmt_forward_jit(enc, dec, src, tgt, lengths, *, hidden):
    tgt = tgt[:-1]                                  # exclude last target token
    S, B, _ = src.shape
    Tm1 = tgt.shape[0]
    S_pad = _round_up(S, 128)                       # attn last dim lane-dense
    T_pad = _round_up(max(Tm1, 1), 16)              # bf16 sublane-friendly rows

    # batch-major id matrices: pad the tiny int32 ids (with index 0), never the
    # big activation tensors; padded source positions are masked by lengths.
    src_ids = _pad_to(jnp.transpose(src[:, :, 0]), (B, S_pad))      # (B, S_pad)
    tgt_ids = _pad_to(jnp.transpose(tgt[:, :, 0]), (B, T_pad))      # (B, T_pad)
    src_emb = enc["embedding"][src_ids]             # (B, S_pad, E_pad) bf16
    tgt_emb = dec["embedding"][tgt_ids]             # (B, T_pad, E_pad) bf16

    lens = lengths.astype(jnp.int32).reshape(B)

    dec_out_p, attn_p = fused_encoder_decoder(
        src_emb, tgt_emb, lens,
        enc["w"], enc["b"],
        dec["w_in"], dec["b_in"], dec["w_h"], dec["w_ctx"], dec["b_out"])

    # slice off padding, then back to OpenNMT time-major convention
    dec_out = jnp.transpose(dec_out_p[:, :Tm1, :hidden], (1, 0, 2))  # (T-1,B,H)
    attn = jnp.transpose(attn_p[:, :Tm1, :S], (1, 0, 2))             # (T-1,B,S)
    return dec_out, {"std": attn}


# ----------------------------------------------------------------------------
# Synthetic model (parameters built deterministically in-script)
# ----------------------------------------------------------------------------
class MultiDecodersNMTModel:
    def __init__(self, encoder_params, decoders_params):
        E, H = encoder_params["w"].shape
        self._E, self._H = E, H
        self._E_pad = _round_up(E, 128)
        self._H_pad = _round_up(H, 128)
        self._enc = self._prepare_encoder(encoder_params)
        self.decoders = {k: self._prepare_decoder(v)
                         for k, v in decoders_params.items()}
        self._decoder = list(self.decoders.values())[0]

    # pad / cast weights ONCE at construction (bf16 MXU operands, f32 biases)
    def _prepare_encoder(self, enc):
        V = enc["embedding"].shape[0]
        return {
            "embedding": _pad_to(enc["embedding"],
                                 (V, self._E_pad)).astype(jnp.bfloat16),
            "w": _pad_to(enc["w"], (self._E_pad, self._H_pad)).astype(jnp.bfloat16),
            "b": _pad_to(enc["b"], (1, self._H_pad)).astype(jnp.float32),
        }

    def _prepare_decoder(self, dec):
        V = dec["embedding"].shape[0]
        H = self._H
        w_h, w_ctx = dec["w_out"][:H], dec["w_out"][H:]     # split the concat
        return {
            "embedding": _pad_to(dec["embedding"],
                                 (V, self._E_pad)).astype(jnp.bfloat16),
            "w_in": _pad_to(dec["w_in"],
                            (self._E_pad, self._H_pad)).astype(jnp.bfloat16),
            "b_in": _pad_to(dec["b_in"], (1, self._H_pad)).astype(jnp.float32),
            "w_h": _pad_to(w_h, (self._H_pad, self._H_pad)).astype(jnp.bfloat16),
            "w_ctx": _pad_to(w_ctx,
                             (self._H_pad, self._H_pad)).astype(jnp.bfloat16),
            "b_out": _pad_to(dec["b_out"], (1, self._H_pad)).astype(jnp.float32),
        }

    def encoder(self):
        return self._enc

    def decoder(self):
        return self._decoder

    def set_level(self, level):
        self._decoder = self.decoders[str(level)]

    def forward(self, src, tgt, levels, lengths, bptt=False):
        level = _get_level(levels)             # host sync; kept outside jit
        self._decoder = self.decoders[str(level)]
        # TODO(synk): decoder.init_state(src, memory_bank, enc_state) — the
        # synthetic attention decoder is stateless, so enc_state / bptt carry
        # nothing here.
        del bptt
        return _nmt_forward_jit(self._enc, self._decoder, src, tgt, lengths,
                                hidden=self._H)

    __call__ = forward


def _make_params(vocab, emb, hidden, num_levels, key):
    keys = jax.random.split(key, 3 + 5 * num_levels)
    scale = 0.1
    encoder = {
        "embedding": scale * jax.random.normal(keys[0], (vocab, emb), jnp.float32),
        "w": scale * jax.random.normal(keys[1], (emb, hidden), jnp.float32),
        "b": scale * jax.random.normal(keys[2], (1, hidden), jnp.float32),
    }
    decoders = {}
    for lv in range(num_levels):
        k = keys[3 + 5 * lv: 3 + 5 * (lv + 1)]
        decoders[str(lv)] = {
            "embedding": scale * jax.random.normal(k[0], (vocab, emb), jnp.float32),
            "w_in": scale * jax.random.normal(k[1], (emb, hidden), jnp.float32),
            "b_in": scale * jax.random.normal(k[2], (1, hidden), jnp.float32),
            "w_out": scale * jax.random.normal(k[3], (2 * hidden, hidden), jnp.float32),
            "b_out": scale * jax.random.normal(k[4], (1, hidden), jnp.float32),
        }
    return encoder, decoders


if __name__ == "__main__":
    VOCAB, EMB, HIDDEN = 16, 32, 32
    SRC_LEN, TGT_LEN, BATCH, NUM_LEVELS = 8, 8, 2, 3

    root = jax.random.PRNGKey(0)
    k_param, k_src, k_tgt = jax.random.split(root, 3)

    encoder_params, decoders_params = _make_params(
        VOCAB, EMB, HIDDEN, NUM_LEVELS, k_param)
    model = MultiDecodersNMTModel(encoder_params, decoders_params)

    src = jax.random.randint(k_src, (SRC_LEN, BATCH, 1), 0, VOCAB, jnp.int32)
    tgt = jax.random.randint(k_tgt, (TGT_LEN, BATCH, 1), 0, VOCAB, jnp.int32)
    lengths = jnp.array([SRC_LEN, SRC_LEN - 3], dtype=jnp.int32)
    levels = jnp.array([1, 1], dtype=jnp.int32)     # all equal -> level 1

    dec_out, attns = model(src, tgt, levels, lengths, bptt=False)
    jax.block_until_ready(dec_out)
    jax.block_until_ready(attns["std"])

    assert dec_out.shape == (TGT_LEN - 1, BATCH, HIDDEN)
    assert attns["std"].shape == (TGT_LEN - 1, BATCH, SRC_LEN)
    assert bool(jnp.all(jnp.isfinite(dec_out)))
    assert bool(jnp.all(jnp.isfinite(attns["std"])))
    print("KERNEL_OK")
</pallas_src>

<mosaic_0001>
module attributes {stable_mosaic.version = 11 : i64} {
  func.func @_fused_enc_dec_kernel(%arg0: i32, %arg1: memref<2xi32, #tpu.memory_space<smem>>, %arg2: memref<1x128x128xbf16, #tpu.memory_space<vmem>>, %arg3: memref<1x16x128xbf16, #tpu.memory_space<vmem>>, %arg4: memref<128x128xbf16, #tpu.memory_space<vmem>>, %arg5: memref<1x128xf32, #tpu.memory_space<vmem>>, %arg6: memref<128x128xbf16, #tpu.memory_space<vmem>>, %arg7: memref<1x128xf32, #tpu.memory_space<vmem>>, %arg8: memref<128x128xbf16, #tpu.memory_space<vmem>>, %arg9: memref<128x128xbf16, #tpu.memory_space<vmem>>, %arg10: memref<1x128xf32, #tpu.memory_space<vmem>>, %arg11: memref<1x16x128xf32, #tpu.memory_space<vmem>>, %arg12: memref<1x16x128xf32, #tpu.memory_space<vmem>>) attributes {dimension_semantics = [#tpu.dimension_semantics<parallel>], iteration_bounds = array<i64: 2>, scalar_prefetch = 1 : i64, scratch_operands = 0 : i64, tpu.core_type = #tpu.core_type<tc>, window_params = [{transform_indices = @transform_0, window_bounds = array<i64: 1, 128, 128>}, {transform_indices = @transform_1, window_bounds = array<i64: 1, 16, 128>}, {pipeline_mode = #tpu.pipeline_mode<synchronous>, transform_indices = @transform_2, window_bounds = array<i64: 128, 128>}, {pipeline_mode = #tpu.pipeline_mode<synchronous>, transform_indices = @transform_3, window_bounds = array<i64: 1, 128>}, {pipeline_mode = #tpu.pipeline_mode<synchronous>, transform_indices = @transform_4, window_bounds = array<i64: 128, 128>}, {pipeline_mode = #tpu.pipeline_mode<synchronous>, transform_indices = @transform_5, window_bounds = array<i64: 1, 128>}, {pipeline_mode = #tpu.pipeline_mode<synchronous>, transform_indices = @transform_6, window_bounds = array<i64: 128, 128>}, {pipeline_mode = #tpu.pipeline_mode<synchronous>, transform_indices = @transform_7, window_bounds = array<i64: 128, 128>}, {pipeline_mode = #tpu.pipeline_mode<synchronous>, transform_indices = @transform_8, window_bounds = array<i64: 1, 128>}, {transform_indices = @transform_9, window_bounds = array<i64: 1, 16, 128>}, {transform_indices = @transform_10, window_bounds = array<i64: 1, 16, 128>}]} {
    %c0 = arith.constant 0 : index
    %c0_0 = arith.constant 0 : index
    %c0_1 = arith.constant 0 : index
    %0 = vector.load %arg2[%c0, %c0_0, %c0_1] : memref<1x128x128xbf16, #tpu.memory_space<vmem>>, vector<1x128x128xbf16>
    %1 = vector.shape_cast %0 : vector<1x128x128xbf16> to vector<128x128xbf16>
    %c0_2 = arith.constant 0 : index
    %c0_3 = arith.constant 0 : index
    %2 = vector.load %arg4[%c0_2, %c0_3] : memref<128x128xbf16, #tpu.memory_space<vmem>>, vector<128x128xbf16>
    %cst = arith.constant dense<0.000000e+00> : vector<128x128xf32>
    %3 = tpu.matmul %1, %2, %cst {dimension_numbers = #tpu.dot_dimension_numbers<[1], [0], [0], [1], [0, 0, 1, 1], [], []>} : vector<128x128xbf16>, vector<128x128xbf16>, vector<128x128xf32> -> vector<128x128xf32>
    %c0_4 = arith.constant 0 : index
    %c0_5 = arith.constant 0 : index
    %4 = vector.load %arg5[%c0_4, %c0_5] : memref<1x128xf32, #tpu.memory_space<vmem>>, vector<1x128xf32>
    %5 = vector.broadcast %4 : vector<1x128xf32> to vector<128x128xf32>
    %6 = arith.addf %3, %5 : vector<128x128xf32>
    %7 = math.tanh %6 : vector<128x128xf32>
    %8 = arith.truncf %7 : vector<128x128xf32> to vector<128x128xbf16>
    %c0_6 = arith.constant 0 : index
    %c0_7 = arith.constant 0 : index
    %c0_8 = arith.constant 0 : index
    %9 = vector.load %arg3[%c0_6, %c0_7, %c0_8] : memref<1x16x128xbf16, #tpu.memory_space<vmem>>, vector<1x16x128xbf16>
    %10 = vector.shape_cast %9 : vector<1x16x128xbf16> to vector<16x128xbf16>
    %c0_9 = arith.constant 0 : index
    %c0_10 = arith.constant 0 : index
    %11 = vector.load %arg6[%c0_9, %c0_10] : memref<128x128xbf16, #tpu.memory_space<vmem>>, vector<128x128xbf16>
    %cst_11 = arith.constant dense<0.000000e+00> : vector<16x128xf32>
    %12 = tpu.matmul %10, %11, %cst_11 {dimension_numbers = #tpu.dot_dimension_numbers<[1], [0], [0], [1], [0, 0, 1, 1], [], []>} : vector<16x128xbf16>, vector<128x128xbf16>, vector<16x128xf32> -> vector<16x128xf32>
    %c0_12 = arith.constant 0 : index
    %c0_13 = arith.constant 0 : index
    %13 = vector.load %arg7[%c0_12, %c0_13] : memref<1x128xf32, #tpu.memory_space<vmem>>, vector<1x128xf32>
    %14 = vector.broadcast %13 : vector<1x128xf32> to vector<16x128xf32>
    %15 = arith.addf %12, %14 : vector<16x128xf32>
    %16 = math.tanh %15 : vector<16x128xf32>
    %17 = arith.truncf %16 : vector<16x128xf32> to vector<16x128xbf16>
    %cst_14 = arith.constant dense<0.000000e+00> : vector<16x128xf32>
    %18 = tpu.matmul %17, %8, %cst_14 {dimension_numbers = #tpu.dot_dimension_numbers<[1], [1], [0], [0], [0, 0, 1, 0], [], []>} : vector<16x128xbf16>, vector<128x128xbf16>, vector<16x128xf32> -> vector<16x128xf32>
    %19 = arith.index_cast %arg0 : i32 to index
    %20 = memref.load %arg1[%19] : memref<2xi32, #tpu.memory_space<smem>>
    %21 = tpu.iota {dimensions = array<i32: 1>} : vector<16x128xi32>
    %22 = vector.broadcast %20 : i32 to vector<16x128xi32>
    %23 = arith.cmpi slt, %21, %22 : vector<16x128xi32>
    %cst_15 = arith.constant -1.000000e+30 : f32
    %24 = vector.broadcast %cst_15 : f32 to vector<16x128xf32>
    %25 = arith.select %23, %18, %24 : vector<16x128xi1>, vector<16x128xf32>
    %cst_16 = arith.constant dense<0xFF800000> : vector<16xf32>
    %26 = vector.multi_reduction <maximumf>, %25, %cst_16 [1] : vector<16x128xf32> to vector<16xf32>
    %27 = vector.shape_cast %26 : vector<16xf32> to vector<16x1xf32>
    %28 = vector.broadcast %27 : vector<16x1xf32> to vector<16x128xf32>
    %29 = arith.subf %25, %28 : vector<16x128xf32>
    %30 = math.exp %29 : vector<16x128xf32>
    %cst_17 = arith.constant dense<0.000000e+00> : vector<16xf32>
    %31 = vector.multi_reduction <add>, %30, %cst_17 [1] : vector<16x128xf32> to vector<16xf32>
    %32 = vector.shape_cast %31 : vector<16xf32> to vector<16x1xf32>
    %33 = tpu.reciprocal %32 {approx = true} : vector<16x1xf32> -> vector<16x1xf32>
    %34 = vector.broadcast %33 : vector<16x1xf32> to vector<16x128xf32>
    %35 = arith.mulf %30, %34 : vector<16x128xf32>
    %36 = arith.truncf %35 : vector<16x128xf32> to vector<16x128xbf16>
    %cst_18 = arith.constant dense<0.000000e+00> : vector<16x128xf32>
    %37 = tpu.matmul %36, %8, %cst_18 {dimension_numbers = #tpu.dot_dimension_numbers<[1], [0], [0], [1], [0, 0, 1, 1], [], []>} : vector<16x128xbf16>, vector<128x128xbf16>, vector<16x128xf32> -> vector<16x128xf32>
    %c0_19 = arith.constant 0 : index
    %c0_20 = arith.constant 0 : index
    %38 = vector.load %arg8[%c0_19, %c0_20] : memref<128x128xbf16, #tpu.memory_space<vmem>>, vector<128x128xbf16>
    %cst_21 = arith.constant dense<0.000000e+00> : vector<16x128xf32>
    %39 = tpu.matmul %17, %38, %cst_21 {dimension_numbers = #tpu.dot_dimension_numbers<[1], [0], [0], [1], [0, 0, 1, 1], [], []>} : vector<16x128xbf16>, vector<128x128xbf16>, vector<16x128xf32> -> vector<16x128xf32>
    %40 = arith.truncf %37 : vector<16x128xf32> to vector<16x128xbf16>
    %c0_22 = arith.constant 0 : index
    %c0_23 = arith.constant 0 : index
    %41 = vector.load %arg9[%c0_22, %c0_23] : memref<128x128xbf16, #tpu.memory_space<vmem>>, vector<128x128xbf16>
    %cst_24 = arith.constant dense<0.000000e+00> : vector<16x128xf32>
    %42 = tpu.matmul %40, %41, %cst_24 {dimension_numbers = #tpu.dot_dimension_numbers<[1], [0], [0], [1], [0, 0, 1, 1], [], []>} : vector<16x128xbf16>, vector<128x128xbf16>, vector<16x128xf32> -> vector<16x128xf32>
    %43 = arith.addf %39, %42 : vector<16x128xf32>
    %c0_25 = arith.constant 0 : index
    %c0_26 = arith.constant 0 : index
    %44 = vector.load %arg10[%c0_25, %c0_26] : memref<1x128xf32, #tpu.memory_space<vmem>>, vector<1x128xf32>
    %45 = vector.broadcast %44 : vector<1x128xf32> to vector<16x128xf32>
    %46 = arith.addf %43, %45 : vector<16x128xf32>
    %47 = math.tanh %46 : vector<16x128xf32>
    %c0_27 = arith.constant 0 : index
    %c0_28 = arith.constant 0 : index
    %c0_29 = arith.constant 0 : index
    %48 = vector.load %arg11[%c0_27, %c0_28, %c0_29] : memref<1x16x128xf32, #tpu.memory_space<vmem>>, vector<1x16x128xf32>
    %49 = vector.shape_cast %48 : vector<1x16x128xf32> to vector<16x128xf32>
    %50 = vector.shape_cast %47 : vector<16x128xf32> to vector<1x16x128xf32>
    tpu.vector_store %arg11[%c0_27, %c0_28, %c0_29], %50 {strides = array<i32>} : memref<1x16x128xf32, #tpu.memory_space<vmem>>, vector<1x16x128xf32>,
    %c0_30 = arith.constant 0 : index
    %c0_31 = arith.constant 0 : index
    %c0_32 = arith.constant 0 : index
    %51 = vector.load %arg12[%c0_30, %c0_31, %c0_32] : memref<1x16x128xf32, #tpu.memory_space<vmem>>, vector<1x16x128xf32>
    %52 = vector.shape_cast %51 : vector<1x16x128xf32> to vector<16x128xf32>
    %53 = vector.shape_cast %35 : vector<16x128xf32> to vector<1x16x128xf32>
    tpu.vector_store %arg12[%c0_30, %c0_31, %c0_32], %53 {strides = array<i32>} : memref<1x16x128xf32, #tpu.memory_space<vmem>>, vector<1x16x128xf32>,
    return
  }
  func.func @transform_0(%arg0: i32, %arg1: memref<2xi32, #tpu.memory_space<smem>>) -> (i32, i32, i32) {
    %c0_i32 = arith.constant 0 : i32
    %c0_i32_0 = arith.constant 0 : i32
    %c0_i32_1 = arith.constant 0 : i32
    return %arg0, %c0_i32, %c0_i32_0 : i32, i32, i32
  }
  func.func @transform_1(%arg0: i32, %arg1: memref<2xi32, #tpu.memory_space<smem>>) -> (i32, i32, i32) {
    %c0_i32 = arith.constant 0 : i32
    %c0_i32_0 = arith.constant 0 : i32
    %c0_i32_1 = arith.constant 0 : i32
    return %arg0, %c0_i32, %c0_i32_0 : i32, i32, i32
  }
  func.func @transform_2(%arg0: i32, %arg1: memref<2xi32, #tpu.memory_space<smem>>) -> (i32, i32) {
    %c0_i32 = arith.constant 0 : i32
    %c0_i32_0 = arith.constant 0 : i32
    %c0_i32_1 = arith.constant 0 : i32
    return %c0_i32, %c0_i32_0 : i32, i32
  }
  func.func @transform_3(%arg0: i32, %arg1: memref<2xi32, #tpu.memory_space<smem>>) -> (i32, i32) {
    %c0_i32 = arith.constant 0 : i32
    %c0_i32_0 = arith.constant 0 : i32
    %c0_i32_1 = arith.constant 0 : i32
    return %c0_i32, %c0_i32_0 : i32, i32
  }
  func.func @transform_4(%arg0: i32, %arg1: memref<2xi32, #tpu.memory_space<smem>>) -> (i32, i32) {
    %c0_i32 = arith.constant 0 : i32
    %c0_i32_0 = arith.constant 0 : i32
    %c0_i32_1 = arith.constant 0 : i32
    return %c0_i32, %c0_i32_0 : i32, i32
  }
  func.func @transform_5(%arg0: i32, %arg1: memref<2xi32, #tpu.memory_space<smem>>) -> (i32, i32) {
    %c0_i32 = arith.constant 0 : i32
    %c0_i32_0 = arith.constant 0 : i32
    %c0_i32_1 = arith.constant 0 : i32
    return %c0_i32, %c0_i32_0 : i32, i32
  }
  func.func @transform_6(%arg0: i32, %arg1: memref<2xi32, #tpu.memory_space<smem>>) -> (i32, i32) {
    %c0_i32 = arith.constant 0 : i32
    %c0_i32_0 = arith.constant 0 : i32
    %c0_i32_1 = arith.constant 0 : i32
    return %c0_i32, %c0_i32_0 : i32, i32
  }
  func.func @transform_7(%arg0: i32, %arg1: memref<2xi32, #tpu.memory_space<smem>>) -> (i32, i32) {
    %c0_i32 = arith.constant 0 : i32
    %c0_i32_0 = arith.constant 0 : i32
    %c0_i32_1 = arith.constant 0 : i32
    return %c0_i32, %c0_i32_0 : i32, i32
  }
  func.func @transform_8(%arg0: i32, %arg1: memref<2xi32, #tpu.memory_space<smem>>) -> (i32, i32) {
    %c0_i32 = arith.constant 0 : i32
    %c0_i32_0 = arith.constant 0 : i32
    %c0_i32_1 = arith.constant 0 : i32
    return %c0_i32, %c0_i32_0 : i32, i32
  }
  func.func @transform_9(%arg0: i32, %arg1: memref<2xi32, #tpu.memory_space<smem>>) -> (i32, i32, i32) {
    %c0_i32 = arith.constant 0 : i32
    %c0_i32_0 = arith.constant 0 : i32
    %c0_i32_1 = arith.constant 0 : i32
    return %arg0, %c0_i32, %c0_i32_0 : i32, i32, i32
  }
  func.func @transform_10(%arg0: i32, %arg1: memref<2xi32, #tpu.memory_space<smem>>) -> (i32, i32, i32) {
    %c0_i32 = arith.constant 0 : i32
    %c0_i32_0 = arith.constant 0 : i32
    %c0_i32_1 = arith.constant 0 : i32
    return %arg0, %c0_i32, %c0_i32_0 : i32, i32, i32
  }
}

</mosaic_0001>

<bundles_post_ra>
// kernel: _nmt_forward_jit.1
= control target key start
LH: loop header
LB: loop body
LE: loop exit
PB: predicated region body
PF: predicated region fallthrough
CT: control target
= control target key end

     0   :  { %s1881_s0 = inlined_call_operand.vmem [shape: s32[2], index: 0, kind: input, shape index: {}]   ;;  %s1882_s1 = inlined_call_operand.vmem [shape: bf16[2,128,128], index: 1, kind: input, shape index: {}]   ;;  %s1883_s2 = inlined_call_operand.vmem [shape: bf16[2,16,128], index: 2, kind: input, shape index: {}]   ;;  %s1884_s3 = inlined_call_operand.vmem [shape: bf16[128,128], index: 3, kind: input, shape index: {}]   ;;  %s1885_s4 = inlined_call_operand.vmem [shape: f32[1,128], index: 4, kind: input, shape index: {}]   ;;  %s1886_s5 = inlined_call_operand.vmem [shape: bf16[128,128], index: 5, kind: input, shape index: {}]   ;;  %s1887_s6 = inlined_call_operand.vmem [shape: f32[1,128], index: 6, kind: input, shape index: {}]   ;;  %s1888_s7 = inlined_call_operand.vmem [shape: bf16[128,128], index: 7, kind: input, shape index: {}]   ;;  %s1889_s8 = inlined_call_operand.vmem [shape: bf16[128,128], index: 8, kind: input, shape index: {}]   ;;  %s1890_s9 = inlined_call_operand.vmem [shape: f32[1,128], index: 9, kind: input, shape index: {}]   ;;  %s1891_s10 = inlined_call_operand.vmem [shape: f32[2,16,128], index: 10, kind: output, shape index: {0}]   ;;  %s1892_s11 = inlined_call_operand.vmem [shape: f32[2,16,128], index: 11, kind: output, shape index: {1}]  }
   0x1   :  { %s17_s19 = sshll.u32 %s1881_s0, 4  ;;  %s18_s19 = int_to_ptr.vmem [resolvable:$true] %s17_s19 }
   0x2   :  { %s1570_s20 = scalar_lea.vmem %s18_s19, 16  ;;  %p1575_p1 = scmp.lt.s32.totalorder %s18_s19, %s18_s19 }
   0x3   :  { %p1571_p0 = scmp.ne.s32.totalorder %s18_s19, %s1570_s20  ;;  %p1576_p2 = scmp.lt.s32.totalorder %s1570_s20, %s1570_s20 }
   0x5   :  { %p1577_p3 = por %p1576_p2, %p1575_p1 }
   0x7   :  { %p1578_p4 = pnand %p1577_p3, %p1571_p0 }
   0x9   :  { %1581 = shalt.err (!%p1578_p4)  }
   0xa   :  { %s1592_s21 = smov [#allocation3]  }
   0xb   :  { %20 = dma.vmem_to_smem %s18_s19, 16, %s1592_s21, [#allocation2] }
   0xc   :  { %1586 = dma.done.wait [#allocation2], 16 }
   0xd   :  { %1587 = vsyncadd [#allocation2], 4294967280 }
   0xe   :  { %22 = sfence }
   0xf   :  { %s1658_s22 = smov 0  }
  0x10 LB: > { %s1664_s0 = sadd.s32 4294967295, %s1590_s22   ;;  %p1218_p5 = scmp.ge.s32.totalorder %s1590_s22, 1  ;;  %s1590_s22 = sphi %s1658_s22, %s28_s22  }
  0x11   : > { %p332_p6 = scmp.lt.s32.totalorder %s1590_s22, 3 }
  0x13   : > { %p333_p7 = pnand %p1218_p5, %p332_p6 }
  0x14   : > { %v1481_v0 = vld [vmem:[%s1884_s3] sm:$0xff] (!%p333_p7)   ;;  %p380_p8 = scmp.lt.s32.totalorder (!%p333_p7), %s1664_s0, 1  ;;  %v1482_v1 = vld [vmem:[%s1884_s3 + $0x8] sm:$0xff] (!%p333_p7)   ;;  %v1593_v2 = vmov (!%p333_p7), 0.0   ;;  %v1483_v3 = vld [vmem:[%s1884_s3 + $0x10] sm:$0xff] (!%p333_p7)   ;;  %vm1594_vm0 = vmmov (!%p333_p7), 0  }
  0x15   : > { %336 = sbr.rel (%p333_p7) target bundleno = 1323 (0x52b), region = 56  ;;  %1338 = vmatprep.subr.bf16.mxu0 (!%p333_p7), %v1481_v0  ;;  %1370 = vmatprep.subr.bf16.mxu1 (!%p333_p7), %v1593_v2  ;;  %v1484_v4 = vld [vmem:[%s1884_s3 + $0x18] sm:$0xff] (!%p333_p7)   ;;  %v1485_v6 = vld [vmem:[%s1884_s3 + $0x20] sm:$0xff] (!%p333_p7)   ;;  %v1486_v8 = vld [vmem:[%s1884_s3 + $0x28] sm:$0xff] (!%p333_p7)   ;;  %s821_s15 = sld [smem:[#allocation3 + %s1664_s0]] (!%p333_p7) }
  0x16   : > { %1339 = vmatpush3.bf16.msra.mxu0 (!%p333_p7), %v1481_v0  ;;  %1386 = vmatprep.mubr.msk.bf16.mxu1 (!%p333_p7), %vm1594_vm0, %v1593_v2  ;;  %v1495_v7 = vld [vmem:[%s1886_s5] sm:$0xff] (!%p333_p7)   ;;  %v1496_v9 = vld [vmem:[%s1886_s5 + $0x8] sm:$0xff] (!%p333_p7)   ;;  %v1487_v10 = vld [vmem:[%s1884_s3 + $0x30] sm:$0xff] (!%p333_p7)  }
  0x17   : > { %1340 = vmatprep.subr.bf16.mxu0 (!%p333_p7), %v1482_v1  ;;  %1371 = vmatpush3.bf16.msra.mxu1 (!%p333_p7), %v1495_v7  ;;  %v1497_v11 = vld [vmem:[%s1886_s5 + $0x10] sm:$0xff] (!%p333_p7)   ;;  %v1488_v12 = vld [vmem:[%s1884_s3 + $0x38] sm:$0xff] (!%p333_p7)   ;;  %v1501_v14 = vld [vmem:[%s1886_s5 + $0x20] sm:$0xff] (!%p333_p7)  }
  0x18   : > { %1372 = vmatprep.subr.bf16.mxu1 (!%p333_p7), %v1593_v2  ;;  %v1500_v13 = vld [vmem:[%s1886_s5 + $0x18] sm:$0xff] (!%p333_p7)   ;;  %v1502_v17 = vld [vmem:[%s1886_s5 + $0x28] sm:$0xff] (!%p333_p7)   ;;  %v1503_v18 = vld [vmem:[%s1886_s5 + $0x30] sm:$0xff] (!%p333_p7)  }
  0x19   : > { %v1504_v21 = vld [vmem:[%s1886_s5 + $0x38] sm:$0xff] (!%p333_p7)   ;;  %v1757_v26 = vld [vmem:[%s1885_s4] ss:$0 sm:$0xff] (!%p333_p7) }
  0x1a   : > { %1341 = vmatpush3.bf16.msra.mxu0 (!%p333_p7), %v1482_v1  ;;  %v1244_v42 = vld [vmem:[%s1887_s6] ss:$0 sm:$0xff] (!%p333_p7) }
  0x1b   : > { %1342 = vmatprep.subr.bf16.mxu0 (!%p333_p7), %v1483_v3  ;;  %1373 = vmatpush3.bf16.msra.mxu1 (!%p333_p7), %v1496_v9 }
  0x1c   : > { %s1676_s27 = scalar_select %p380_p8, %s1664_s0, 1  ;;  %1374 = vmatprep.subr.bf16.mxu1 %v1593_v2 }
  0x1e   : > { %s1273_s30 = sshll.u32 %s1676_s27, 6  ;;  %1343 = vmatpush3.bf16.msra.mxu0 %v1483_v3  ;;  %s1274_s12 = sshll.u32 %s1676_s27, 3 }
  0x1f   : > { %s1688_s14 = scalar_lea.vmem %s1882_s1, %s1273_s30  ;;  %1344 = vmatprep.subr.bf16.mxu0 %v1484_v4  ;;  %s389_s18 = scalar_lea.vmem %s1883_s2, %s1274_s12  ;;  %1375 = vmatpush3.bf16.msra.mxu1 %v1497_v11 }
  0x20   : > { %v1489_v5 = vld [vmem:[%s1688_s14] sm:$0xff]   ;;  %1376 = vmatprep.subr.bf16.mxu1 %v1593_v2  ;;  %v1490_v15 = vld [vmem:[%s1688_s14 + $0x8] sm:$0xff]   ;;  %v1491_v16 = vld [vmem:[%s1688_s14 + $0x10] sm:$0xff]   ;;  %s1275_s0 = sshll.u32 %s1676_s27, 4 }
  0x21   : > { %1354 = vmatprep.mubr.bf16.mxu0 %v1489_v5  ;;  %v1492_v19 = vld [vmem:[%s1688_s14 + $0x18] sm:$0xff]   ;;  %v1493_v20 = vld [vmem:[%s1688_s14 + $0x20] sm:$0xff]   ;;  %v1494_v23 = vld [vmem:[%s1688_s14 + $0x28] sm:$0xff]   ;;  %s394_s23 = scalar_lea.vmem %s1891_s10, %s1275_s0 }
  0x22   : > { %1345 = vmatpush3.bf16.msra.mxu0 %v1484_v4  ;;  %v1505_v22 = vld [vmem:[%s389_s18] sm:$0xff]   ;;  %v1498_v24 = vld [vmem:[%s1688_s14 + $0x30] sm:$0xff]   ;;  %v1499_v25 = vld [vmem:[%s1688_s14 + $0x38] sm:$0xff]   ;;  %s399_s18 = scalar_lea.vmem %s1892_s11, %s1275_s0 }
  0x23   : > { %1346 = vmatprep.subr.bf16.mxu0 %v1485_v6  ;;  %1377 = vmatpush3.bf16.msra.mxu1 %v1500_v13 }
  0x24   : > { %1378 = vmatprep.subr.bf16.mxu1 %v1593_v2 }
  0x26   : > { %1347 = vmatpush3.bf16.msra.mxu0 %v1485_v6 }
  0x27   : > { %1348 = vmatprep.subr.bf16.mxu0 %v1486_v8  ;;  %1379 = vmatpush3.bf16.msra.mxu1 %v1501_v14 }
  0x28   : > { %1380 = vmatprep.subr.bf16.mxu1 %v1593_v2 }
  0x2a   : > { %1349 = vmatpush3.bf16.msra.mxu0 %v1486_v8 }
  0x2b   : > { %1350 = vmatprep.subr.bf16.mxu0 %v1487_v10  ;;  %1381 = vmatpush3.bf16.msra.mxu1 %v1502_v17 }
  0x2c   : > { %1382 = vmatprep.subr.bf16.mxu1 %v1593_v2 }
  0x2e   : > { %1351 = vmatpush3.bf16.msra.mxu0 %v1487_v10 }
  0x2f   : > { %1352 = vmatprep.subr.bf16.mxu0 %v1488_v12  ;;  %1383 = vmatpush3.bf16.msra.mxu1 %v1503_v18 }
  0x30   : > { %1384 = vmatprep.subr.bf16.mxu1 %v1593_v2 }
  0x32   : > { %1353 = vmatpush3.bf16.msra.mxu0 %v1488_v12 }
  0x33   : > { %1390 = vmatprep.subr.bf16.mxu0 %v1593_v2  ;;  %1385 = vmatpush3.bf16.msra.mxu1 %v1504_v21 }
  0x34   : > { %1410 = vmatprep.subr.bf16.mxu1 %v1593_v2 }
  0x35   : > { %1355 = vmatmul.mubr.bf16.vlgmr.msra.gmra.mrb[0].mxu0 %v1490_v15 }
  0x36   : > { %1358 = vmatprep.mubr.bf16.mxu0 %v1491_v16  ;;  %1387 = vmatmul.mubr.bf16.vlgmr.msra.gmra.mrb[0].mxu1 %v1505_v22 }
  0x37   : > { %1426 = vmatprep.mubr.msk.bf16.mxu1 %vm1594_vm0, %v1593_v2 }
  0x3d   : > { %1359 = vmatmul.mubr.bf16.gmra.mrb[4].mxu0 %v1492_v19 }
  0x3e   : > { %1362 = vmatprep.mubr.bf16.mxu0 %v1493_v20 }
  0x45   : > { %1363 = vmatmul.mubr.bf16.gmra.mrb[8].mxu0 %v1494_v23 }
  0x46   : > { %1366 = vmatprep.mubr.bf16.mxu0 %v1498_v24 }
  0x4d   : > { %1367 = vmatmul.mubr.bf16.gmra.mrb[12].mxu0 %v1499_v25 }
  0x4e   : > { %1406 = vmatprep.mubr.msk.bf16.mxu0 %vm1594_vm0, %v1593_v2 }
 0x108   : > { %v1356_v27 = vpop.f32.mrb[0].mxu0 }
 0x109   : > { %v579_v28 = vadd.f32 %v1356_v27, %v1757_v26  ;;  %v570_v29 = vpop.f32.mrb[1].mxu0  ;;  %v770_v45 = vpop.f32.mrb[0].mxu1 }
 0x10a   : > { %v571_v30 = vadd.f32 %v1757_v26, %v570_v29  ;;  %v1357_v31 = vpop.f32.mrb[2].mxu0  ;;  %v771_v47 = vadd.f32 %v1244_v42, %v770_v45  ;;  %v1388_v48 = vpop.f32.mrb[1].mxu1 }
 0x10b   : > { %1522 = vtanh.f32 %v579_v28  ;;  %v582_v32 = vadd.f32 %v1357_v31, %v1757_v26  ;;  %v573_v33 = vpop.f32.mrb[3].mxu0  ;;  %v773_v50 = vpop.f32.mrb[2].mxu1  ;;  %v1507_v31 = vld [vmem:[%s1888_s7 + $0x8] sm:$0xff]  }
 0x10c   : > { %1524 = vtanh.f32 %v571_v30  ;;  %v574_v34 = vadd.f32 %v1757_v26, %v573_v33  ;;  %v774_v54 = vadd.f32 %v1244_v42, %v773_v50  ;;  %v1389_v55 = vpop.f32.mrb[3].mxu1  ;;  %v1506_v30 = vld [vmem:[%s1888_s7] sm:$0xff]   ;;  %v1509_v33 = vld [vmem:[%s1888_s7 + $0x18] sm:$0xff]  }
 0x10d   : > { %1526 = vtanh.f32 %v582_v32  ;;  %v1508_v32 = vld [vmem:[%s1888_s7 + $0x10] sm:$0xff]  }
 0x10e   : > { %1528 = vtanh.f32 %v574_v34  ;;  %v1510_v34 = vld [vmem:[%s1888_s7 + $0x20] sm:$0xff]  }
 0x110   : > { %v1360_v35 = vpop.f32.mrb[4].mxu0 }
 0x111   : > { %v595_v36 = vadd.f32 %v1360_v35, %v1757_v26  ;;  %v586_v37 = vpop.f32.mrb[5].mxu0  ;;  %v1511_v35 = vld [vmem:[%s1888_s7 + $0x28] sm:$0xff]  }
 0x112   : > { %v587_v38 = vadd.f32 %v1757_v26, %v586_v37  ;;  %v1361_v39 = vpop.f32.mrb[6].mxu0  ;;  %v1513_v37 = vld [vmem:[%s1888_s7 + $0x38] sm:$0xff]  }
 0x113   : > { %1530 = vtanh.f32 %v595_v36  ;;  %v598_v40 = vadd.f32 %v1361_v39, %v1757_v26  ;;  %v589_v41 = vpop.f32.mrb[7].mxu0  ;;  %v1512_v36 = vld [vmem:[%s1888_s7 + $0x30] sm:$0xff]  }
 0x114   : > { %1532 = vtanh.f32 %v587_v38  ;;  %v590_v43 = vadd.f32 %v1757_v26, %v589_v41  ;;  %v822_v38 = vlaneseq }
 0x115   : > { %v1523_v44 = vpop.eup %1522  ;;  %1534 = vtanh.f32 %v598_v40  ;;  %v824_v40 = vstv %s821_s15 }
 0x116   : > { %v1525_v46 = vpop.eup %1524  ;;  %1536 = vtanh.f32 %v590_v43  ;;  %v823_v39 = vand.u32 127, %v822_v38 }
 0x117   : > { %v1527_v49 = vpop.eup %1526  ;;  %1538 = vtanh.f32 %v771_v47 }
 0x118   : > { %v1529_v51 = vpop.eup %1528  ;;  %v650_v52 = vpack.c.bf16 %v1527_v49, %v1523_v44  ;;  %v1364_v53 = vpop.f32.mrb[8].mxu0  ;;  %1540 = vtanh.f32 %v774_v54  ;;  %vm825_vm1 = vcmp.lt.s32.totalorder %v823_v39, %v824_v40 }
 0x119   : > { %v649_v56 = vpack.c.bf16 %v1529_v51, %v1525_v46  ;;  %v611_v57 = vadd.f32 %v1364_v53, %v1757_v26  ;;  %v602_v58 = vpop.f32.mrb[9].mxu0 }
 0x11a   : > { %v603_v59 = vadd.f32 %v1757_v26, %v602_v58  ;;  %v1365_v60 = vpop.f32.mrb[10].mxu0 }
 0x11b   : > { %1391 = vmatpush3.bf16.xpose.msra.mxu0 %v649_v56  ;;  %1411 = vmatpush3.bf16.msra.mxu1 %v649_v56  ;;  %1542 = vtanh.f32 %v611_v57  ;;  %v614_v61 = vadd.f32 %v1365_v60, %v1757_v26  ;;  %v605_v62 = vpop.f32.mrb[11].mxu0 }
 0x11c   : > { %1412 = vmatprep.subr.bf16.mxu1 %v1593_v2  ;;  %1544 = vtanh.f32 %v603_v59  ;;  %1392 = vmatprep.subr.bf16.mxu0 %v1593_v2  ;;  %v606_v63 = vadd.f32 %v1757_v26, %v605_v62 }
 0x11d   : > { %v1531_v0 = vpop.eup %1530  ;;  %1546 = vtanh.f32 %v614_v61 }
 0x11e   : > { %v1533_v1 = vpop.eup %1532  ;;  %1548 = vtanh.f32 %v606_v63 }
 0x11f   : > { %v1535_v3 = vpop.eup %1534  ;;  %1413 = vmatpush3.bf16.msra.mxu1 %v650_v52 }
 0x120   : > { %v1537_v4 = vpop.eup %1536  ;;  %1414 = vmatprep.subr.bf16.mxu1 %v1593_v2  ;;  %v652_v5 = vpack.c.bf16 %v1535_v3, %v1531_v0  ;;  %v1368_v6 = vpop.f32.mrb[12].mxu0 }
 0x121   : > { %v651_v7 = vpack.c.bf16 %v1537_v4, %v1533_v1  ;;  %v627_v8 = vadd.f32 %v1368_v6, %v1757_v26  ;;  %v618_v9 = vpop.f32.mrb[13].mxu0  ;;  %v1539_v10 = vpop.eup %1538  ;;  %v1514_v1 = vld [vmem:[%s1889_s8] sm:$0xff]   ;;  %v1515_v4 = vld [vmem:[%s1889_s8 + $0x8] sm:$0xff]   ;;  %v1517_v6 = vld [vmem:[%s1889_s8 + $0x18] sm:$0xff]  }
 0x122   : > { %v619_v11 = vadd.f32 %v1757_v26, %v618_v9  ;;  %v1369_v12 = vpop.f32.mrb[14].mxu0  ;;  %v1541_v15 = vpop.eup %1540  ;;  %v1520_v9 = vld [vmem:[%s1889_s8 + $0x30] sm:$0xff]  }
 0x123   : > { %1393 = vmatpush3.bf16.xpose.msra.mxu0 %v650_v52  ;;  %1415 = vmatpush3.bf16.msra.mxu1 %v651_v7  ;;  %1550 = vtanh.f32 %v627_v8  ;;  %v630_v13 = vadd.f32 %v1369_v12, %v1757_v26  ;;  %v621_v14 = vpop.f32.mrb[15].mxu0  ;;  %v779_v18 = vpack.c.bf16 %v1541_v15, %v1539_v10  ;;  %v1519_v8 = vld [vmem:[%s1889_s8 + $0x28] sm:$0xff]   ;;  %v1521_v10 = vld [vmem:[%s1889_s8 + $0x38] sm:$0xff]  }
 0x124   : > { %1416 = vmatprep.subr.bf16.mxu1 %v1593_v2  ;;  %1394 = vmatprep.subr.bf16.mxu0 %v1593_v2  ;;  %1552 = vtanh.f32 %v619_v11  ;;  %v622_v16 = vadd.f32 %v1757_v26, %v621_v14 }
 0x125   : > { %v1543_v17 = vpop.eup %1542  ;;  %1554 = vtanh.f32 %v630_v13 }
 0x126   : > { %v1545_v19 = vpop.eup %1544  ;;  %1556 = vtanh.f32 %v622_v16 }
 0x127   : > { %v1547_v20 = vpop.eup %1546  ;;  %1417 = vmatpush3.bf16.msra.mxu1 %v652_v5 }
 0x128   : > { %v1549_v21 = vpop.eup %1548  ;;  %1418 = vmatprep.subr.bf16.mxu1 %v1593_v2  ;;  %v654_v22 = vpack.c.bf16 %v1547_v20, %v1543_v17  ;;  %v1270_v17 = vld [vmem:[%s1890_s9] ss:$0 sm:$0xff] }
 0x129   : > { %v653_v23 = vpack.c.bf16 %v1549_v21, %v1545_v19 }
 0x12b   : > { %1395 = vmatpush3.bf16.xpose.msra.mxu0 %v651_v7  ;;  %1419 = vmatpush3.bf16.msra.mxu1 %v653_v23  ;;  %v1518_v7 = vld [vmem:[%s1889_s8 + $0x20] sm:$0xff]  }
 0x12c   : > { %1396 = vmatprep.subr.bf16.mxu0 %v1593_v2  ;;  %1420 = vmatprep.subr.bf16.mxu1 %v1593_v2 }
 0x12d   : > { %v1551_v24 = vpop.eup %1550 }
 0x12e   : > { %v1553_v25 = vpop.eup %1552 }
 0x12f   : > { %v1555_v26 = vpop.eup %1554  ;;  %1421 = vmatpush3.bf16.msra.mxu1 %v654_v22 }
 0x130   : > { %v1557_v27 = vpop.eup %1556  ;;  %1422 = vmatprep.subr.bf16.mxu1 %v1593_v2  ;;  %v656_v28 = vpack.c.bf16 %v1555_v26, %v1551_v24 }
 0x131   : > { %v655_v29 = vpack.c.bf16 %v1557_v27, %v1553_v25 }
 0x133   : > { %1397 = vmatpush3.bf16.xpose.msra.mxu0 %v652_v5  ;;  %1423 = vmatpush3.bf16.msra.mxu1 %v655_v29  ;;  %v1516_v5 = vld [vmem:[%s1889_s8 + $0x10] sm:$0xff]  }
 0x134   : > { %1398 = vmatprep.subr.bf16.mxu0 %v1593_v2  ;;  %1424 = vmatprep.subr.bf16.mxu1 %v1593_v2 }
 0x137   : > { %1425 = vmatpush3.bf16.msra.mxu1 %v656_v28 }
 0x138   : > { %1430 = vmatprep.subr.bf16.mxu1 %v1593_v2 }
 0x13b   : > { %1399 = vmatpush3.bf16.xpose.msra.mxu0 %v653_v23 }
 0x13c   : > { %1400 = vmatprep.subr.bf16.mxu0 %v1593_v2 }
 0x143   : > { %1401 = vmatpush3.bf16.xpose.msra.mxu0 %v654_v22 }
 0x144   : > { %1402 = vmatprep.subr.bf16.mxu0 %v1593_v2 }
 0x14b   : > { %1403 = vmatpush3.bf16.xpose.msra.mxu0 %v655_v29 }
 0x14c   : > { %1404 = vmatprep.subr.bf16.mxu0 %v1593_v2 }
 0x153   : > { %1405 = vmatpush3.bf16.xpose.msra.mxu0 %v656_v28 }
 0x154   : > { %1450 = vmatprep.subr.bf16.mxu0 %v1593_v2 }
 0x15a   : > { %1407 = vmatmul.mubr.bf16.vlgmr.msra.gmra.mrb[16].mxu0 %v779_v18 }
 0x15b   : > { %1451 = vmatpush3.bf16.msra.mxu0 %v1506_v30  ;;  %1466 = vmatprep.mubr.msk.bf16.mxu0 %vm1594_vm0, %v1593_v2 }
 0x15c   : > { %1452 = vmatprep.subr.bf16.mxu0 %v1593_v2 }
 0x15f   : > { %1453 = vmatpush3.bf16.msra.mxu0 %v1507_v31 }
 0x160   : > { %1454 = vmatprep.subr.bf16.mxu0 %v1593_v2 }
 0x163   : > { %1455 = vmatpush3.bf16.msra.mxu0 %v1508_v32 }
 0x164   : > { %1456 = vmatprep.subr.bf16.mxu0 %v1593_v2 }
 0x167   : > { %1457 = vmatpush3.bf16.msra.mxu0 %v1509_v33 }
 0x168   : > { %1458 = vmatprep.subr.bf16.mxu0 %v1593_v2 }
 0x16b   : > { %1459 = vmatpush3.bf16.msra.mxu0 %v1510_v34 }
 0x16c   : > { %1460 = vmatprep.subr.bf16.mxu0 %v1593_v2 }
 0x16f   : > { %1461 = vmatpush3.bf16.msra.mxu0 %v1511_v35 }
 0x170   : > { %1462 = vmatprep.subr.bf16.mxu0 %v1593_v2 }
 0x173   : > { %1463 = vmatpush3.bf16.msra.mxu0 %v1512_v36 }
 0x174   : > { %1464 = vmatprep.subr.bf16.mxu0 %v1593_v2 }
 0x177   : > { %1465 = vmatpush3.bf16.msra.mxu0 %v1513_v37 }
 0x17a   : > { %1467 = vmatmul.mubr.bf16.vlgmr.msra.gmra.mrb[20].mxu0 %v779_v18 }
 0x22d   : > { %v814_v41 = vpop.f32.mrb[16].mxu0 }
 0x22e   : > { %v1408_v42 = vpop.f32.mrb[17].mxu0  ;;  %v826_v43 = vsel %vm825_vm1, %v814_v41, -1e+30 }
 0x22f   : > { %828 = vmax.xlane.f32.xlu0 %v826_v43  ;;  %v817_v44 = vpop.f32.mrb[18].mxu0 }
 0x230   : > { %v1409_v45 = vpop.f32.mrb[19].mxu0  ;;  %v827_v46 = vsel %vm825_vm1, %v817_v44, -1e+30 }
 0x233   : > { %830 = vmax.xlane.f32.xlu0 %v827_v46 }
 0x24d   : > { %v1092_v47 = vpop.f32.mrb[20].mxu0 }
 0x24e   : > { %v1468_v48 = vpop.f32.mrb[21].mxu0 }
 0x24f   : > { %v1828_v49 = vpop.f32.mrb[22].mxu0 }
 0x250   : > { %v1469_v50 = vpop.f32.mrb[23].mxu0 }
 0x2bc   : > { %v829_v51 = vpop.xlane.xlu0 %828 }
 0x2bd   : > { %v832_v52 = vsub.f32 %v826_v43, %v829_v51 }
 0x2bf   : > { %v834_v53 = vmul.f32 1.442695, %v832_v52 }
 0x2c0   : > { %v831_v54 = vpop.xlane.xlu0 %830 }
 0x2c1   : > { %1558 = vpow2.f32 %v834_v53  ;;  %v833_v55 = vsub.f32 %v827_v46, %v831_v54 }
 0x2c3   : > { %v836_v56 = vmul.f32 1.442695, %v833_v55 }
 0x2c5   : > { %1560 = vpow2.f32 %v836_v56 }
 0x2cb   : > { %v1559_v57 = vpop.eup %1558 }
 0x2cc   : > { %838 = vadd.xlane.f32.xlu1 %v1559_v57 }
 0x2cf   : > { %v1561_v58 = vpop.eup %1560 }
 0x2d0   : > { %840 = vadd.xlane.f32.xlu1 %v1561_v58 }
 0x359   : > { %v839_v59 = vpop.xlane.xlu1 %838 }
 0x35a   : > { %1562 = vrcp.f32 %v839_v59 }
 0x35d   : > { %v841_v60 = vpop.xlane.xlu1 %840 }
 0x35e   : > { %1564 = vrcp.f32 %v841_v60 }
 0x364   : > { %v1563_v61 = vpop.eup %1562 }
 0x365   : > { %v844_v62 = vmul.f32 %v1563_v61, %v1559_v57 }
 0x367   : > { %1112 = vst [vmem:[%s399_s18] sm:$0xff] %v844_v62 }
 0x368   : > { %v1565_v63 = vpop.eup %1564 }
 0x369   : > { %v845_v0 = vmul.f32 %v1565_v63, %v1561_v58 }
 0x36b   : > { %v846_v3 = vpack.c.bf16 %v845_v0, %v844_v62  ;;  %1113 = vst [vmem:[%s399_s18 + $0x8] sm:$0xff] %v845_v0 }
 0x36d   : > { %1427 = vmatmul.mubr.bf16.vlgmr.msra.gmra.mrb[4].mxu1 %v846_v3 }
 0x36e   : > { %1431 = vmatpush3.bf16.msra.mxu1 %v1514_v1  ;;  %1446 = vmatprep.mubr.msk.bf16.mxu1 %vm1594_vm0, %v1593_v2 }
 0x36f   : > { %1432 = vmatprep.subr.bf16.mxu1 %v1593_v2 }
 0x372   : > { %1433 = vmatpush3.bf16.msra.mxu1 %v1515_v4 }
 0x373   : > { %1434 = vmatprep.subr.bf16.mxu1 %v1593_v2 }
 0x376   : > { %1435 = vmatpush3.bf16.msra.mxu1 %v1516_v5 }
 0x377   : > { %1436 = vmatprep.subr.bf16.mxu1 %v1593_v2 }
 0x37a   : > { %1437 = vmatpush3.bf16.msra.mxu1 %v1517_v6 }
 0x37b   : > { %1438 = vmatprep.subr.bf16.mxu1 %v1593_v2 }
 0x37e   : > { %1439 = vmatpush3.bf16.msra.mxu1 %v1518_v7 }
 0x37f   : > { %1440 = vmatprep.subr.bf16.mxu1 %v1593_v2 }
 0x382   : > { %1441 = vmatpush3.bf16.msra.mxu1 %v1519_v8 }
 0x383   : > { %1442 = vmatprep.subr.bf16.mxu1 %v1593_v2 }
 0x386   : > { %1443 = vmatpush3.bf16.msra.mxu1 %v1520_v9 }
 0x387   : > { %1444 = vmatprep.subr.bf16.mxu1 %v1593_v2 }
 0x38a   : > { %1445 = vmatpush3.bf16.msra.mxu1 %v1521_v10 }
 0x440   : > { %v881_v11 = vpop.f32.mrb[4].mxu1 }
 0x441   : > { %v1428_v12 = vpop.f32.mrb[5].mxu1 }
 0x442   : > { %v884_v13 = vpop.f32.mrb[6].mxu1 }
 0x443   : > { %v904_v14 = vpack.c.bf16 %v884_v13, %v881_v11  ;;  %v1429_v15 = vpop.f32.mrb[7].mxu1 }
 0x445   : > { %1447 = vmatmul.mubr.bf16.vlgmr.msra.gmra.mrb[8].mxu1 %v904_v14 }
 0x518   : > { %v1003_v16 = vpop.f32.mrb[8].mxu1 }
 0x519   : > { %v1093_v18 = vadd.f32 %v1092_v47, %v1003_v16  ;;  %v1448_v19 = vpop.f32.mrb[9].mxu1 }
 0x51a   : > { %v1006_v2 = vpop.f32.mrb[10].mxu1 }
 0x51b   : > { %v1106_v20 = vadd.f32 %v1270_v17, %v1093_v18  ;;  %v1096_v21 = vadd.f32 %v1828_v49, %v1006_v2  ;;  %v1449_v22 = vpop.f32.mrb[11].mxu1 }
 0x51d   : > { %1566 = vtanh.f32 %v1106_v20  ;;  %v1107_v23 = vadd.f32 %v1270_v17, %v1096_v21 }
 0x51f   : > { %1568 = vtanh.f32 %v1107_v23 }
 0x527   : > { %v1567_v24 = vpop.eup %1566 }
 0x528   : > { %1110 = vst [vmem:[%s394_s23] sm:$0xff] %v1567_v24 }
 0x529   : > { %v1569_v25 = vpop.eup %1568 }
 0x52a   : > { %1111 = vst [vmem:[%s394_s23 + $0x8] sm:$0xff] %v1569_v25 }
 0x52b PF: > { %s28_s22 = sadd.s32 1, %s1590_s22  }
 0x52c   : > { %p25_p9 = scmp.ge.s32.totalorder %s28_s22, 4  }
 0x52e   :  { %27 = sbr.rel (!%p25_p9) target bundleno = 16 (0x10), region = 101 }

</bundles_post_ra>
